<compile_context>
chip_gen: v7x
topology: tpu7x:2x2x1
jax: 0.10.0
libtpu: 0.0.40
codegen_flags: <defaults>
</compile_context>

<pallas_src>
import functools

import jax
import jax.numpy as jnp
from jax.experimental import pallas as pl
from jax.experimental.pallas import tpu as pltpu

IGNORE_INDEX = -100
_SUBLANES = 8
_LANES = 128


def _ce_partial_kernel(logits_ref, labels_ref, out_ref):
    """One row tile: write this tile's partial sum of token losses."""
    logits = logits_ref[...].astype(jnp.float32)             # (TM, V)
    labels = labels_ref[...]                                  # (TM, 1) int32

    # loss = logsumexp(logits) - logits[label]
    #      = log(sum(exp(logits - m))) - (logits[label] - m)   (row max cancels)
    m = jnp.max(logits, axis=-1, keepdims=True)               # (TM, 1)
    shifted = logits - m                                       # (TM, V)
    log_z = jnp.log(jnp.sum(jnp.exp(shifted), axis=-1, keepdims=True))  # (TM,1)

    # Gather the label's (shifted) logit via a one-hot compare with a lane iota.
    col = jax.lax.broadcasted_iota(jnp.int32, shifted.shape, 1)
    picked = jnp.sum(jnp.where(col == labels, shifted, 0.0),
                     axis=-1, keepdims=True)                   # (TM, 1)

    valid = labels != IGNORE_INDEX                             # (TM, 1)
    per_row = jnp.where(valid, log_z - picked, 0.0)            # (TM, 1)

    partial = jnp.sum(per_row)                                 # f32 scalar
    # Lane/sublane-dense (1, 8, 128) block -> unmasked vector store.
    out_ref[...] = jnp.broadcast_to(partial, (1, _SUBLANES, _LANES))


def _round_up(x, m):
    return ((x + m - 1) // m) * m


@functools.partial(jax.jit, static_argnames=("tm", "vmem_budget_bytes"))
def gpt_lm_loss(logits, labels, *, tm=256, vmem_budget_bytes=32 * 1024 * 1024):
    """logits: [B, T, V] float; labels: [B, T] int. Returns scalar f32 loss."""
    B, T, V = logits.shape
    N = B * T

    # Label-side shift (tiny): row (b, t) predicts labels[b, t+1]; the last
    # position of each sequence is ignored.
    shift_labels = jnp.concatenate(
        [labels[:, 1:], jnp.full((B, 1), IGNORE_INDEX, labels.dtype)], axis=1
    ).reshape(-1).astype(jnp.int32)                            # (N,)
    n_valid = jnp.sum((shift_labels != IGNORE_INDEX).astype(jnp.float32))

    # Logits: free, contiguous reshape only — no HBM copy, no pad copy.
    flat_logits = logits.reshape(N, V)

    # Row tile: largest multiple of 16 whose double-buffered logits block fits
    # the VMEM budget, capped by the (rounded-up) row count.
    itemsize = jnp.dtype(logits.dtype).itemsize
    max_tm = max(16, vmem_budget_bytes // (2 * V * itemsize))
    tm_eff = int(min(tm, max_tm, _round_up(N, 16)))
    tm_eff = max(16, (tm_eff // 16) * 16)

    grid = pl.cdiv(N, tm_eff)

    # Pad the (tiny) label column so every row of every tile has a label; rows
    # past N — whose logits block reads out-of-bounds padding — are ignored.
    n_pad = grid * tm_eff - N
    if n_pad:
        shift_labels = jnp.concatenate(
            [shift_labels, jnp.full((n_pad,), IGNORE_INDEX, jnp.int32)])
    labels_col = shift_labels.reshape(-1, 1)                   # (grid*tm, 1)

    partials = pl.pallas_call(
        _ce_partial_kernel,
        out_shape=jax.ShapeDtypeStruct((grid, _SUBLANES, _LANES), jnp.float32),
        grid_spec=pltpu.PrefetchScalarGridSpec(
            num_scalar_prefetch=0,
            grid=(grid,),
            in_specs=[
                pl.BlockSpec((tm_eff, V), lambda i: (i, 0)),
                pl.BlockSpec((tm_eff, 1), lambda i: (i, 0)),
            ],
            out_specs=pl.BlockSpec((1, _SUBLANES, _LANES), lambda i: (i, 0, 0)),
        ),
        compiler_params=pltpu.CompilerParams(
            dimension_semantics=("parallel",),
            vmem_limit_bytes=64 * 1024 * 1024,
        ),
    )(flat_logits, labels_col)

    loss_sum = jnp.sum(partials[:, 0, 0])
    # NOTE: if every label is IGNORE_INDEX this divides by zero (NaN), which
    # matches torch.nn.CrossEntropyLoss(ignore_index=...) behavior.
    return loss_sum / n_valid


def _reference_loss(logits, labels):
    """Pure-JAX reference mirroring torch.nn.CrossEntropyLoss(ignore_index=-100)."""
    B, T, V = logits.shape
    sl = logits[:, :-1, :].reshape(-1, V).astype(jnp.float32)
    sy = labels[:, 1:].reshape(-1)
    lse = jax.scipy.special.logsumexp(sl, axis=-1)
    picked = jnp.take_along_axis(
        sl, jnp.clip(sy, 0, V - 1)[:, None], axis=-1)[:, 0]
    valid = sy != IGNORE_INDEX
    per = jnp.where(valid, lse - picked, 0.0)
    return jnp.sum(per) / jnp.sum(valid.astype(jnp.float32))


def _make_inputs(key, B, T, V, dtype=jnp.float32):
    k1, k2, k3 = jax.random.split(key, 3)
    logits = jax.random.normal(k1, (B, T, V), dtype=jnp.float32).astype(dtype)
    labels = jax.random.randint(k2, (B, T), 0, V, dtype=jnp.int32)
    ignore_mask = jax.random.bernoulli(k3, p=0.2, shape=(B, T))
    labels = jnp.where(ignore_mask, IGNORE_INDEX, labels)
    return logits, labels


if __name__ == "__main__":
    key = jax.random.PRNGKey(0)
    k_a, k_b, k_c = jax.random.split(key, 3)

    # 1) Small exact-fit case (B=2, T=8, V=128), f32.
    logits, labels = _make_inputs(k_a, 2, 8, 128, jnp.float32)
    loss = gpt_lm_loss(logits, labels)
    jax.block_until_ready(loss)
    ref = _reference_loss(logits, labels)
    assert jnp.allclose(loss, ref, rtol=1e-5, atol=1e-5), (loss, ref)

    # 2) Non-dividing row count + multi-tile grid (exercises label padding and
    #    the partial last logits block).
    logits2, labels2 = _make_inputs(k_b, 2, 17, 128, jnp.float32)
    loss2 = gpt_lm_loss(logits2, labels2, tm=16)
    jax.block_until_ready(loss2)
    ref2 = _reference_loss(logits2, labels2)
    assert jnp.allclose(loss2, ref2, rtol=1e-5, atol=1e-5), (loss2, ref2)

    # 3) bf16 logits stay bf16 through the DMA; upcast only inside the kernel.
    logits3, labels3 = _make_inputs(k_c, 2, 8, 128, jnp.bfloat16)
    loss3 = gpt_lm_loss(logits3, labels3)
    jax.block_until_ready(loss3)
    ref3 = _reference_loss(logits3, labels3)
    assert jnp.allclose(loss3, ref3, rtol=1e-5, atol=1e-5), (loss3, ref3)

    print("KERNEL_OK")
</pallas_src>

<mosaic_0001>
module attributes {stable_mosaic.version = 11 : i64} {
  func.func @_ce_partial_kernel(%arg0: i32, %arg1: memref<16x128xf32, #tpu.memory_space<vmem>>, %arg2: memref<16x1xi32, #tpu.memory_space<vmem>>, %arg3: memref<1x8x128xf32, #tpu.memory_space<vmem>>) attributes {dimension_semantics = [#tpu.dimension_semantics<parallel>], iteration_bounds = array<i64: 1>, scalar_prefetch = 0 : i64, scratch_operands = 0 : i64, tpu.core_type = #tpu.core_type<tc>, window_params = [{transform_indices = @transform_0, window_bounds = array<i64: 16, 128>}, {transform_indices = @transform_1, window_bounds = array<i64: 16, 1>}, {transform_indices = @transform_2, window_bounds = array<i64: 1, 8, 128>}]} {
    %c0 = arith.constant 0 : index
    %c0_0 = arith.constant 0 : index
    %0 = vector.load %arg1[%c0, %c0_0] : memref<16x128xf32, #tpu.memory_space<vmem>>, vector<16x128xf32>
    %c0_1 = arith.constant 0 : index
    %c0_2 = arith.constant 0 : index
    %1 = vector.load %arg2[%c0_1, %c0_2] : memref<16x1xi32, #tpu.memory_space<vmem>>, vector<16x1xi32>
    %cst = arith.constant dense<0xFF800000> : vector<16xf32>
    %2 = vector.multi_reduction <maximumf>, %0, %cst [1] : vector<16x128xf32> to vector<16xf32>
    %3 = vector.shape_cast %2 : vector<16xf32> to vector<16x1xf32>
    %4 = vector.broadcast %3 : vector<16x1xf32> to vector<16x128xf32>
    %5 = arith.subf %0, %4 : vector<16x128xf32>
    %6 = math.exp %5 : vector<16x128xf32>
    %cst_3 = arith.constant dense<0.000000e+00> : vector<16xf32>
    %7 = vector.multi_reduction <add>, %6, %cst_3 [1] : vector<16x128xf32> to vector<16xf32>
    %8 = vector.shape_cast %7 : vector<16xf32> to vector<16x1xf32>
    %9 = math.log %8 : vector<16x1xf32>
    %10 = tpu.iota {dimensions = array<i32: 1>} : vector<16x128xi32>
    %11 = vector.broadcast %1 : vector<16x1xi32> to vector<16x128xi32>
    %12 = arith.cmpi eq, %10, %11 : vector<16x128xi32>
    %cst_4 = arith.constant 0.000000e+00 : f32
    %13 = vector.broadcast %cst_4 : f32 to vector<16x128xf32>
    %14 = arith.select %12, %5, %13 : vector<16x128xi1>, vector<16x128xf32>
    %cst_5 = arith.constant dense<0.000000e+00> : vector<16xf32>
    %15 = vector.multi_reduction <add>, %14, %cst_5 [1] : vector<16x128xf32> to vector<16xf32>
    %16 = vector.shape_cast %15 : vector<16xf32> to vector<16x1xf32>
    %c-100_i32 = arith.constant -100 : i32
    %17 = vector.broadcast %c-100_i32 : i32 to vector<16x1xi32>
    %18 = arith.cmpi ne, %1, %17 : vector<16x1xi32>
    %19 = arith.subf %9, %16 : vector<16x1xf32>
    %cst_6 = arith.constant 0.000000e+00 : f32
    %20 = vector.broadcast %cst_6 : f32 to vector<16x1xf32>
    %21 = arith.select %18, %19, %20 : vector<16x1xi1>, vector<16x1xf32>
    %22 = vector.shape_cast %21 : vector<16x1xf32> to vector<1x16x1xf32>
    %cst_7 = arith.constant dense<0.000000e+00> : vector<1xf32>
    %23 = vector.multi_reduction <add>, %22, %cst_7 [1, 2] : vector<1x16x1xf32> to vector<1xf32>
    %24 = vector.shape_cast %23 : vector<1xf32> to vector<1x1x1xf32>
    %25 = vector.extract %24[0, 0, 0] : f32 from vector<1x1x1xf32>
    %26 = vector.broadcast %25 : f32 to vector<1x8x128xf32>
    %c0_8 = arith.constant 0 : index
    %c0_9 = arith.constant 0 : index
    %c0_10 = arith.constant 0 : index
    %27 = vector.load %arg3[%c0_8, %c0_9, %c0_10] : memref<1x8x128xf32, #tpu.memory_space<vmem>>, vector<1x8x128xf32>
    tpu.vector_store %arg3[%c0_8, %c0_9, %c0_10], %26 {strides = array<i32>} : memref<1x8x128xf32, #tpu.memory_space<vmem>>, vector<1x8x128xf32>,
    return
  }
  func.func @transform_0(%arg0: i32) -> (i32, i32) {
    %c0_i32 = arith.constant 0 : i32
    %c0_i32_0 = arith.constant 0 : i32
    return %arg0, %c0_i32 : i32, i32
  }
  func.func @transform_1(%arg0: i32) -> (i32, i32) {
    %c0_i32 = arith.constant 0 : i32
    %c0_i32_0 = arith.constant 0 : i32
    return %arg0, %c0_i32 : i32, i32
  }
  func.func @transform_2(%arg0: i32) -> (i32, i32, i32) {
    %c0_i32 = arith.constant 0 : i32
    %c0_i32_0 = arith.constant 0 : i32
    %c0_i32_1 = arith.constant 0 : i32
    return %arg0, %c0_i32, %c0_i32_0 : i32, i32, i32
  }
}

</mosaic_0001>

<bundles_post_ra>
// kernel: gpt_lm_loss.1
= control target key start
LH: loop header
LB: loop body
LE: loop exit
PB: predicated region body
PF: predicated region fallthrough
CT: control target
= control target key end

     0   :  { %7 = vsyncpa [#allocation3], 0  ;;  %s262_s0 = inlined_call_operand.hbm [shape: f32[16,128], index: 0, kind: input, shape index: {}]   ;;  %s263_s1 = inlined_call_operand.hbm [shape: s32[16,1], index: 1, kind: input, shape index: {}]   ;;  %s264_s2 = inlined_call_operand.hbm [shape: f32[1,8,128], index: 2, kind: output, shape index: {}]  }
   0x1   :  { %8 = vsyncpa [#allocation6], 0 }
   0x2   :  { %9 = vsyncpa [#allocation4], 0  ;;  %s205_s9 = smov [#allocation2]   ;;  %s133_s13 = scalar_lea.hbm %s262_s0, 256 }
   0x3   :  { %s15_s10 = sshll.u32 %s205_s9, 4  ;;  %p134_p0 = scmp.ne.s32.totalorder %s262_s0, %s133_s13  ;;  %s16_s10 = int_to_ptr.vmem [resolvable:$true] %s15_s10 }
   0x4   :  { %p137_p1 = scmp.lt.u32.totalorder %s133_s13, %s262_s0 }
   0x6   :  { %p139_p2 = pnand %p137_p1, %p134_p0 }
   0x8   :  { %142 = shalt.err (!%p139_p2)
}
   0x9   :  { %s143_s18 = scalar_lea.vmem %s16_s10, 256  ;;  %p148_p4 = scmp.lt.s32.totalorder %s16_s10, %s16_s10 }
   0xa   :  { %p144_p3 = scmp.ne.s32.totalorder %s16_s10, %s143_s18  ;;  %p149_p5 = scmp.lt.s32.totalorder %s143_s18, %s143_s18 }
   0xc   :  { %p150_p6 = por %p149_p5, %p148_p4 }
   0xe   :  { %p151_p7 = pnand %p150_p6, %p144_p3 }
  0x10   :  { %154 = shalt.err (!%p151_p7)
}
  0x11   :  { %s206_s19 = smov 128   ;;  %s207_s20 = smov 8  }
  0x12   :  { %21 = dma.hbm_to_vmem [thread:$0]  %s262_s0, 256, %s16_s10, [#allocation3], %s206_s19, %s206_s19, %s207_s20  }
  0x13   :  { %s208_s23 = smov [#allocation5]   ;;  %s155_s27 = scalar_lea.hbm %s263_s1, 256 }
  0x14   :  { %s27_s24 = sshll.u32 %s208_s23, 4  ;;  %p156_p8 = scmp.ne.s32.totalorder %s263_s1, %s155_s27  ;;  %s28_s24 = int_to_ptr.vmem [resolvable:$true] %s27_s24 }
  0x15   :  { %p159_p9 = scmp.lt.u32.totalorder %s155_s27, %s263_s1 }
  0x17   :  { %p161_p10 = pnand %p159_p9, %p156_p8 }
  0x19   :  { %164 = shalt.err (!%p161_p10)
}
  0x1a   :  { %s165_s4 = scalar_lea.vmem %s28_s24, 256  ;;  %p170_p12 = scmp.lt.s32.totalorder %s28_s24, %s28_s24 }
  0x1b   :  { %p166_p11 = scmp.ne.s32.totalorder %s28_s24, %s165_s4  ;;  %p171_p13 = scmp.lt.s32.totalorder %s165_s4, %s165_s4 }
  0x1d   :  { %p172_p0 = por %p171_p13, %p170_p12 }
  0x1f   :  { %p173_p1 = pnand %p172_p0, %p166_p11 }
  0x21   :  { %176 = shalt.err (!%p173_p1)
}
  0x22   :  { %33 = dma.hbm_to_vmem [thread:$0]  %s263_s1, 256, %s28_s24, [#allocation6], %s206_s19, %s206_s19, %s207_s20  }
  0x23   :  { %199 = dma.done.wait [#allocation3], 256  }
  0x24   :  { %200 = vsyncadd [#allocation3], 4294967040 }
  0x25   :  { %201 = dma.done.wait [#allocation6], 256  }
  0x26   :  { %202 = vsyncadd [#allocation6], 4294967040  ;;  %v209_v0 = vmov 0   ;;  %v40_v1 = vld [vmem:[#allocation2] sm:$0xff]  ;;  %v42_v2 = vld [vmem:[#allocation5] sm:$0xff]  ;;  %v62_v11 = vlaneseq  ;;  %vm84_vm4 = vcmask 7168  }
  0x27   :  { %123 = vset.pattern.permute.xlu1 %v209_v0  ;;  %124 = vset.pattern.permute.xlu0 %v209_v0  ;;  %v41_v3 = vld [vmem:[#allocation2 + $0x8] sm:$0xff]  ;;  %v43_v4 = vld [vmem:[#allocation5 + $0x8] sm:$0xff]  ;;  %vm78_vm2 = vcmp.ne.s32.totalorder %v42_v2, 4294967196  ;;  %s210_s1 = smov [#allocation7]  }
  0x28   :  { %44 = vmax.xlane.f32.xlu0 %v40_v1  ;;  %65 = vperm.xlu1 %123, %v42_v2   ;;  %v63_v13 = vand.u32 127, %v62_v11  ;;  %vm79_vm3 = vcmp.ne.s32.totalorder %v43_v4, 4294967196  ;;  %s105_s6 = sshll.u32 %s210_s1, 4  ;;  %s106_s6 = int_to_ptr.vmem [resolvable:$true] %s105_s6 }
  0x29   :  { %s177_s8 = scalar_lea.vmem %s106_s6, 128  ;;  %p182_p3 = scmp.lt.s32.totalorder %s106_s6, %s106_s6 }
  0x2a   :  { %p178_p2 = scmp.ne.s32.totalorder %s106_s6, %s177_s8  ;;  %p183_p4 = scmp.lt.s32.totalorder %s177_s8, %s177_s8 }
  0x2c   :  { %46 = vmax.xlane.f32.xlu0 %v41_v3  ;;  %68 = vperm.xlu1 %123, %v43_v4   ;;  %p184_p5 = por %p183_p4, %p182_p3 }
  0x2e   :  { %p185_p6 = pnand %p184_p5, %p178_p2 }
  0xa7   :  { %v66_v12 = vpop.permute.xlu1 %65 }
  0xa8   :  { %vm70_vm0 = vcmp.eq.s32.totalorder %v63_v13, %v66_v12 }
  0xab   :  { %v69_v15 = vpop.permute.xlu1 %68 }
  0xac   :  { %vm71_vm1 = vcmp.eq.s32.totalorder %v63_v13, %v69_v15 }
  0xb5   :  { %v45_v5 = vpop.xlane.xlu0 %44 }
  0xb6   :  { %v48_v6 = vsub.f32 %v40_v1, %v45_v5 }
  0xb8   :  { %v50_v7 = vmul.f32 1.442695, %v48_v6  ;;  %v72_v17 = vsel %vm70_vm0, %v48_v6, 0.0 }
  0xb9   :  { %v47_v8 = vpop.xlane.xlu0 %46 }
  0xba   :  { %125 = vpow2.f32 %v50_v7  ;;  %v49_v9 = vsub.f32 %v41_v3, %v47_v8 }
  0xbc   :  { %v52_v10 = vmul.f32 1.442695, %v49_v9  ;;  %v73_v18 = vsel %vm71_vm1, %v49_v9, 0.0 }
  0xbe   :  { %127 = vpow2.f32 %v52_v10 }
  0xc4   :  { %v126_v14 = vpop.eup %125 }
  0xc5   :  { %54 = vadd.xlane.f32.xlu0 %v126_v14 }
  0xc8   :  { %v128_v16 = vpop.eup %127 }
  0xc9   :  { %74 = vadd.xlane.f32.xlu0 %v72_v17  ;;  %56 = vadd.xlane.f32.xlu1 %v128_v16 }
  0xcd   :  { %76 = vadd.xlane.f32.xlu0 %v73_v18 }
 0x152   :  { %v55_v19 = vpop.xlane.xlu0 %54 }
 0x153   :  { %129 = vlog2.f32 %v55_v19 }
 0x156   :  { %v57_v20 = vpop.xlane.xlu1 %56  ;;  %v75_v22 = vpop.xlane.xlu0 %74 }
 0x157   :  { %131 = vlog2.f32 %v57_v20 }
 0x15a   :  { %v77_v27 = vpop.xlane.xlu0 %76 }
 0x15d   :  { %v130_v21 = vpop.eup %129 }
 0x15e   :  { %v59_v23 = vmul.f32 0.6931472, %v130_v21 }
 0x160   :  { %v80_v24 = vsub.f32 %v59_v23, %v75_v22 }
 0x161   :  { %v132_v25 = vpop.eup %131 }
 0x162   :  { %v61_v26 = vmul.f32 0.6931472, %v132_v25  ;;  %v82_v28 = vsel %vm78_vm2, %v80_v24, 0.0 }
 0x163   :  { %v85_v31 = vsel %vm84_vm4, %v82_v28, 0.0 }
 0x164   :  { %v81_v29 = vsub.f32 %v61_v26, %v77_v27 }
 0x166   :  { %v83_v30 = vsel %vm79_vm3, %v81_v29, 0.0 }
 0x167   :  { %v86_v32 = vsel %vm84_vm4, %v83_v30, 0.0 }
 0x168   :  { %v87_v33 = vadd.f32 %v86_v32, %v85_v31 }
 0x16a   :  { %88 = vadd.xlane.f32.xlu0 %v87_v33 }
 0x1f7   :  { %v89_v34 = vpop.xlane.xlu0 %88 }
 0x1f8   :  { %v90_v35 = vrot.slane %v89_v34, 4 }
 0x1fa   :  { %v91_v36 = vadd.f32 %v90_v35, %v89_v34 }
 0x1fc   :  { %v92_v37 = vrot.slane %v91_v36, 2 }
 0x1fe   :  { %v93_v38 = vadd.f32 %v92_v37, %v91_v36 }
 0x200   :  { %v94_v39 = vrot.slane %v93_v38, 1 }
 0x202   :  { %v95_v40 = vadd.f32 %v94_v39, %v93_v38 }
 0x204   :  { %115 = vpush %v95_v40 }
 0x235   :  { %s116_s7 = spop %115 }
 0x236   :  { %v97_v41 = vstv %s116_s7 }
 0x237   :  { %98 = vst [vmem:[#allocation7] sm:$0xff] %v97_v41 }
 0x238   :  { %188 = shalt.err (!%p185_p6)
}
 0x239   :  { %s189_s11 = scalar_lea.hbm %s264_s2, 128 }
 0x23a   :  { %p190_p7 = scmp.ne.s32.totalorder %s264_s2, %s189_s11  ;;  %p193_p8 = scmp.lt.u32.totalorder %s189_s11, %s264_s2 }
 0x23c   :  { %p195_p9 = pnand %p193_p8, %p190_p7 }
 0x23e   :  { %198 = shalt.err (!%p195_p9)
}
 0x23f   :  { %108 = dma.vmem_to_hbm [thread:$0]  %s106_s6, 128, %s264_s2, [#allocation4]  }
 0x240   :  { %203 = dma.done.wait [#allocation4], 128  }
 0x241   :  { %204 = vsyncadd [#allocation4], 4294967168 }
 0x242   :  { %112 = vsyncpa [#allocation3], 1 }
 0x243   :  { %113 = vsyncpa [#allocation6], 1 }
 0x244   :  { %114 = vsyncpa [#allocation4], 1 }

</bundles_post_ra>
